<compile_context>
chip_gen: v7x
topology: tpu7x:2x2x1
jax: 0.10.0
libtpu: 0.0.40
codegen_flags: <defaults>
</compile_context>

<pallas_src>
import functools

import jax
import jax.numpy as jnp
from jax.experimental import pallas as pl
from jax.experimental.pallas import tpu as pltpu


# Per-input, per-step VMEM block target.  2 inputs x 2 pipeline buffers x 2 MiB
# (+ f32 temporaries) stays well under the 32 MiB scoped-VMEM limit on every
# generation (v7x has only 64 MiB physical VMEM).
_TARGET_BLOCK_BYTES = 2 * 1024 * 1024


def _sse_kernel(x_ref, y_ref, o_ref):
    """Per-(channel, N-tile) sum of squared errors, accumulated over R-tiles.

    x_ref, y_ref : (TN, 1, TR, L) VMEM tiles of one channel of the inputs.
    o_ref        : (1, 1, L)      f32 per-lane partial sums for this (c, n).
    """
    @pl.when(pl.program_id(2) == 0)
    def _():
        o_ref[...] = jnp.zeros_like(o_ref)

    d = x_ref[...].astype(jnp.float32) - y_ref[...].astype(jnp.float32)
    s = d * d                                   # (TN, 1, TR, L)
    s = jnp.sum(s, axis=0)                      # (1, TR, L)  cheap vreg adds
    s = jnp.sum(s, axis=1, keepdims=True)       # (1, 1, L)   one sublane reduce
    o_ref[...] += s                             # lane-dense accumulate in VMEM


def _factor_spatial(H, W):
    """Split H*W into (R, L) with L a multiple of 128 if possible (free reshape)."""
    M = H * W
    for L in (1024, 512, 256, 128):
        if M % L == 0:
            return M // L, L
    return H, W  # fallback: keep original spatial dims (full-dim blocks stay legal)


def _largest_divisor_leq(n, cap, multiple_of=1):
    for d in range(min(n, max(cap, 1)), 0, -1):
        if n % d == 0 and d % multiple_of == 0:
            return d
    return None


def _choose_blocks(N, R, L, itemsize):
    """Pick (TN, TR) exact divisors of (N, R) targeting ~_TARGET_BLOCK_BYTES."""
    plane_bytes = R * L * itemsize
    if plane_bytes <= _TARGET_BLOCK_BYTES:
        tn = _largest_divisor_leq(N, _TARGET_BLOCK_BYTES // plane_bytes) or 1
        return tn, R
    # A single (R, L) plane is already larger than the target: tile its rows.
    cap_rows = max(8, _TARGET_BLOCK_BYTES // (L * itemsize))
    tr = _largest_divisor_leq(R, cap_rows, multiple_of=8)
    if tr is None:
        tr = R  # rare fallback; keeps the (8,128)/full-dim tiling rule intact
    return 1, tr


def _per_channel_sse(x, y):
    """x, y: (N, C, H, W).  Returns (C,) float32 per-channel sum of squared errors."""
    N, C, H, W = x.shape
    R, L = _factor_spatial(H, W)
    x_v = x.reshape(N, C, R, L)                 # contiguous reshape: no HBM copy
    y_v = y.reshape(N, C, R, L)

    TN, TR = _choose_blocks(N, R, L, x.dtype.itemsize)
    NB = N // TN                                # number of N-tiles
    RB = R // TR                                # number of R-tiles (reduction)
    grid = (C, NB, RB)

    out = pl.pallas_call(
        _sse_kernel,
        # One (1, L) partial row per (channel, N-tile); flattened leading dim so
        # the out-block's last two dims equal the full array dims (tiling rule).
        out_shape=jax.ShapeDtypeStruct((C * NB, 1, L), jnp.float32),
        grid_spec=pltpu.PrefetchScalarGridSpec(
            num_scalar_prefetch=0,
            grid=grid,
            in_specs=[
                pl.BlockSpec((TN, 1, TR, L), lambda c, n, r: (n, c, r, 0)),
                pl.BlockSpec((TN, 1, TR, L), lambda c, n, r: (n, c, r, 0)),
            ],
            out_specs=pl.BlockSpec((1, 1, L), lambda c, n, r: (c * NB + n, 0, 0)),
        ),
        compiler_params=pltpu.CompilerParams(
            # Both leading axes are independent -> megacore (v7x) shards them.
            dimension_semantics=("parallel", "parallel", "arbitrary"),
            vmem_limit_bytes=32 * 1024 * 1024,
        ),
    )(x_v, y_v)
    # Single cross-lane reduction, done once in XLA on a tiny (C*NB, 1, L) array.
    return jnp.sum(out.reshape(C, NB * L), axis=1)      # (C,) f32


@functools.partial(jax.jit, static_argnames=("channel_weights", "size_average"))
def channel_mse_loss(x, y, channel_weights=None, size_average=True):
    """Forward pass of ChannelMSELoss (reduce=True).  x, y: (N, C, H, W)."""
    assert x.shape == y.shape
    N, C, H, W = x.shape

    sse = _per_channel_sse(x, y)                # (C,) f32 sum of squared errors

    if channel_weights is None:
        total = jnp.sum(sse)
        if size_average:
            total = total / jnp.float32(N * C * H * W)
        return total

    assert len(channel_weights) == 3, "error: channel weights must be 3"
    assert C == 3, "channel_weights path requires 3-channel inputs"
    per = sse / jnp.float32(N * H * W) if size_average else sse
    w = jnp.asarray(channel_weights, dtype=jnp.float32)
    return w[0] * per[0] + w[1] * per[1] + w[2] * per[2]


def _reference(x, y, channel_weights=None, size_average=True):
    """Pure-JAX reference mirroring F.mse_loss(reduce=True)."""
    if channel_weights is None:
        d = (x.astype(jnp.float32) - y.astype(jnp.float32)) ** 2
        return jnp.mean(d) if size_average else jnp.sum(d)
    losses = []
    for c in range(3):
        d = (x[:, c].astype(jnp.float32) - y[:, c].astype(jnp.float32)) ** 2
        losses.append(jnp.mean(d) if size_average else jnp.sum(d))
    w = channel_weights
    return w[0] * losses[0] + w[1] * losses[1] + w[2] * losses[2]


if __name__ == "__main__":
    key = jax.random.PRNGKey(0)
    k1, k2, k3, k4 = jax.random.split(key, 4)

    # Plain MSE mode (arbitrary channel count): (N, C, H, W) = (2, 4, 16, 16)
    x4 = jax.random.normal(k1, (2, 4, 16, 16), dtype=jnp.float32)
    y4 = jax.random.normal(k2, (2, 4, 16, 16), dtype=jnp.float32)
    loss_mean = channel_mse_loss(x4, y4, channel_weights=None, size_average=True)
    loss_sum = channel_mse_loss(x4, y4, channel_weights=None, size_average=False)

    # Weighted per-channel mode (requires C == 3): (2, 3, 16, 16)
    x3 = jax.random.normal(k3, (2, 3, 16, 16), dtype=jnp.float32)
    y3 = jax.random.normal(k4, (2, 3, 16, 16), dtype=jnp.float32)
    weights = (0.5, 0.3, 0.2)
    loss_weighted = channel_mse_loss(x3, y3, channel_weights=weights, size_average=True)

    jax.block_until_ready((loss_mean, loss_sum, loss_weighted))

    ref_mean = _reference(x4, y4, None, True)
    ref_sum = _reference(x4, y4, None, False)
    ref_weighted = _reference(x3, y3, weights, True)

    assert jnp.allclose(loss_mean, ref_mean, rtol=1e-5, atol=1e-5), (loss_mean, ref_mean)
    assert jnp.allclose(loss_sum, ref_sum, rtol=1e-4, atol=1e-4), (loss_sum, ref_sum)
    assert jnp.allclose(loss_weighted, ref_weighted, rtol=1e-5, atol=1e-5), (
        loss_weighted, ref_weighted)

    print("KERNEL_OK")
</pallas_src>

<mosaic_0001>
module attributes {stable_mosaic.version = 11 : i64} {
  func.func @_sse_kernel(%arg0: i32, %arg1: i32, %arg2: i32, %arg3: memref<2x1x1x256xf32, #tpu.memory_space<vmem>>, %arg4: memref<2x1x1x256xf32, #tpu.memory_space<vmem>>, %arg5: memref<1x1x256xf32, #tpu.memory_space<vmem>>) attributes {dimension_semantics = [#tpu.dimension_semantics<parallel>, #tpu.dimension_semantics<parallel>, #tpu.dimension_semantics<arbitrary>], iteration_bounds = array<i64: 4, 1, 1>, scalar_prefetch = 0 : i64, scratch_operands = 0 : i64, tpu.core_type = #tpu.core_type<tc>, window_params = [{transform_indices = @transform_0, window_bounds = array<i64: 2, 1, 1, 256>}, {transform_indices = @transform_1, window_bounds = array<i64: 2, 1, 1, 256>}, {transform_indices = @transform_2, window_bounds = array<i64: 1, 1, 256>}]} {
    %c0_i32 = arith.constant 0 : i32
    %0 = arith.cmpi eq, %arg2, %c0_i32 : i32
    %1 = arith.extui %0 : i1 to i32
    %c0_i32_0 = arith.constant 0 : i32
    %2 = arith.cmpi ne, %1, %c0_i32_0 : i32
    scf.if %2 {
      %cst_15 = arith.constant 0.000000e+00 : f32
      %13 = vector.broadcast %cst_15 : f32 to vector<1x1x256xf32>
      %c0_16 = arith.constant 0 : index
      %c0_17 = arith.constant 0 : index
      %c0_18 = arith.constant 0 : index
      %14 = vector.load %arg5[%c0_16, %c0_17, %c0_18] : memref<1x1x256xf32, #tpu.memory_space<vmem>>, vector<1x1x256xf32>
      tpu.vector_store %arg5[%c0_16, %c0_17, %c0_18], %13 {strides = array<i32>} : memref<1x1x256xf32, #tpu.memory_space<vmem>>, vector<1x1x256xf32>,
    } else {
    }
    %c0 = arith.constant 0 : index
    %c0_1 = arith.constant 0 : index
    %c0_2 = arith.constant 0 : index
    %c0_3 = arith.constant 0 : index
    %3 = vector.load %arg3[%c0, %c0_1, %c0_2, %c0_3] : memref<2x1x1x256xf32, #tpu.memory_space<vmem>>, vector<2x1x1x256xf32>
    %c0_4 = arith.constant 0 : index
    %c0_5 = arith.constant 0 : index
    %c0_6 = arith.constant 0 : index
    %c0_7 = arith.constant 0 : index
    %4 = vector.load %arg4[%c0_4, %c0_5, %c0_6, %c0_7] : memref<2x1x1x256xf32, #tpu.memory_space<vmem>>, vector<2x1x1x256xf32>
    %5 = arith.subf %3, %4 : vector<2x1x1x256xf32>
    %6 = arith.mulf %5, %5 : vector<2x1x1x256xf32>
    %cst = arith.constant dense<0.000000e+00> : vector<1x1x256xf32>
    %7 = vector.multi_reduction <add>, %6, %cst [0] : vector<2x1x1x256xf32> to vector<1x1x256xf32>
    %cst_8 = arith.constant dense<0.000000e+00> : vector<1x256xf32>
    %8 = vector.multi_reduction <add>, %7, %cst_8 [1] : vector<1x1x256xf32> to vector<1x256xf32>
    %9 = vector.shape_cast %8 : vector<1x256xf32> to vector<1x1x256xf32>
    %c0_9 = arith.constant 0 : index
    %c0_10 = arith.constant 0 : index
    %c0_11 = arith.constant 0 : index
    %10 = vector.load %arg5[%c0_9, %c0_10, %c0_11] : memref<1x1x256xf32, #tpu.memory_space<vmem>>, vector<1x1x256xf32>
    %11 = arith.addf %10, %9 : vector<1x1x256xf32>
    %c0_12 = arith.constant 0 : index
    %c0_13 = arith.constant 0 : index
    %c0_14 = arith.constant 0 : index
    %12 = vector.load %arg5[%c0_12, %c0_13, %c0_14] : memref<1x1x256xf32, #tpu.memory_space<vmem>>, vector<1x1x256xf32>
    tpu.vector_store %arg5[%c0_12, %c0_13, %c0_14], %11 {strides = array<i32>} : memref<1x1x256xf32, #tpu.memory_space<vmem>>, vector<1x1x256xf32>,
    return
  }
  func.func @transform_0(%arg0: i32, %arg1: i32, %arg2: i32) -> (i32, i32, i32, i32) {
    %c0_i32 = arith.constant 0 : i32
    %c0_i32_0 = arith.constant 0 : i32
    return %arg1, %arg0, %arg2, %c0_i32 : i32, i32, i32, i32
  }
  func.func @transform_1(%arg0: i32, %arg1: i32, %arg2: i32) -> (i32, i32, i32, i32) {
    %c0_i32 = arith.constant 0 : i32
    %c0_i32_0 = arith.constant 0 : i32
    return %arg1, %arg0, %arg2, %c0_i32 : i32, i32, i32, i32
  }
  func.func @transform_2(%arg0: i32, %arg1: i32, %arg2: i32) -> (i32, i32, i32) {
    %c1_i32 = arith.constant 1 : i32
    %0 = arith.muli %arg0, %c1_i32 : i32
    %1 = arith.addi %0, %arg1 : i32
    %c0_i32 = arith.constant 0 : i32
    %c0_i32_0 = arith.constant 0 : i32
    %c0_i32_1 = arith.constant 0 : i32
    return %1, %c0_i32, %c0_i32_0 : i32, i32, i32
  }
}

</mosaic_0001>

<bundles_post_ra>
// kernel: channel_mse_loss.1
= control target key start
LH: loop header
LB: loop body
LE: loop exit
PB: predicated region body
PF: predicated region fallthrough
CT: control target
= control target key end

     0   :  { %s566_s9 = smov 0   ;;  %s568_s10 = smov 0   ;;  %s653_s0 = inlined_call_operand.vmem [shape: f32[2,4,1,256], index: 0, kind: input, shape index: {}]   ;;  %s654_s1 = inlined_call_operand.vmem [shape: f32[2,4,1,256], index: 1, kind: input, shape index: {}]   ;;  %s655_s2 = inlined_call_operand.vmem [shape: f32[4,1,256], index: 2, kind: output, shape index: {}]  }
   0x1   :  { %s570_s11 = smov 0   ;;  %s572_s12 = smov 0  }
   0x2   :  { %s574_s13 = smov 0  }
   0x3 LB: > { %s31_s14 = sadd.s32 1, %s543_s12  ;;  %p49_p1 = scmp.ne.s32.totalorder %s535_s10, %s531_s9  ;;  %s547_s13 = sphi %s574_s13, %s12_s13   ;;  %s543_s12 = sphi %s572_s12, %s662_s12   ;;  %s539_s11 = sphi %s570_s11, %s661_s11   ;;  %s535_s10 = sphi %s568_s10, %s660_s10   ;;  %s531_s9 = sphi %s566_s9, %s659_s9  }
   0x4   : > { %p33_p0 = scmp.ge.s32.totalorder %s31_s14, 4  ;;  %p50_p2 = scmp.eq.s32.totalorder %s547_s13, 0 }
   0x5   : > { %s42_s17 = sadd.s32 1, %s535_s10  ;;  %p456_p5 = scmp.ge.s32.totalorder %s547_s13, 4 }
   0x6   : > { %s664_s14 = smov (%p33_p0, %s31_s14), 0  ;;  %p597_p3 = por %p50_p2, %p49_p1 }
   0x7   : > { %s36_s16 = ssub.s32 %s543_s12, %s664_s14  ;;  %133 = sbr.rel (%p456_p5) target bundleno = 28 (0x1c), region = 16 }
   0x8   : > { %p40_p4 = scmp.eq.s32.totalorder %s36_s16, 0 }
   0xa   : > { %s605_s18 = scalar_select %p40_p4, %s535_s10, %s42_s17  }
   0xe   : > { %136 = sbr.rel (!%p597_p3) target bundleno = 21 (0x15), region = 20  ;;  %s138_s19 = sand.u32 (%p597_p3), 1, %s535_s10  }
   0xf   : > { %s458_s20 = sshll.u32 (%p597_p3), %s543_s12, 1  ;;  %s457_s21 = sshll.u32 (%p597_p3), %s138_s19, 2 }
  0x10   : > { %s147_s24 = scalar_lea.vmem (%p597_p3), %s653_s0, %s458_s20  ;;  %s140_s25 = scalar_lea.vmem (%p597_p3), [#allocation2], %s457_s21 }
  0x11   : > { %v163_v0 = vld [vmem:[%s147_s24] sm:$0x3] (%p597_p3)  ;;  %v165_v1 = vld [vmem:[%s147_s24 + $0x8] sm:$0x3] (%p597_p3) }
  0x12   : > { %164 = vst [vmem:[%s140_s25] sm:$0x3] (%p597_p3), %v163_v0  ;;  %166 = vst [vmem:[%s140_s25 + $0x2] sm:$0x3] (%p597_p3), %v165_v1 }
  0x15 PF: > { %185 = sbr.rel (!%p597_p3) target bundleno = 28 (0x1c), region = 54  ;;  %s187_s26 = sand.u32 (%p597_p3), 1, %s535_s10  }
  0x16   : > { %s460_s27 = sshll.u32 (%p597_p3), %s543_s12, 1  ;;  %s459_s28 = sshll.u32 (%p597_p3), %s187_s26, 2 }
  0x17   : > { %s196_s3 = scalar_lea.vmem (%p597_p3), %s654_s1, %s460_s27  ;;  %s189_s4 = scalar_lea.vmem (%p597_p3), [#allocation3], %s459_s28 }
  0x18   : > { %v212_v2 = vld [vmem:[%s196_s3] sm:$0x3] (%p597_p3)  ;;  %v214_v3 = vld [vmem:[%s196_s3 + $0x8] sm:$0x3] (%p597_p3) }
  0x19   : > { %213 = vst [vmem:[%s189_s4] sm:$0x3] (%p597_p3), %v212_v2  ;;  %215 = vst [vmem:[%s189_s4 + $0x2] sm:$0x3] (%p597_p3), %v214_v3 }
  0x1c PF: > { %p461_p6 = scmp.ge.s32.totalorder %s547_s13, 1  ;;  %p233_p7 = scmp.lt.s32.totalorder %s547_s13, 5 }
  0x1e   : > { %p234_p8 = pnand %p461_p6, %p233_p7 }
  0x1f   : > { %s240_s5 = sand.u32 (!%p234_p8), 1, %s531_s9   ;;  %p275_p9 = scmp.lt.s32.totalorder (!%p234_p8), %s539_s11, 3  ;;  %v284_v4 = vlaneseq (!%p234_p8)  ;;  %v549_v11 = vmov (!%p234_p8), 1966171168   ;;  %v550_v17 = vmov (!%p234_p8), 0.0   ;;  %vm319_vm1 = vcmask (!%p234_p8), 1040384  }
  0x20   : > { %237 = sbr.rel (%p234_p8) target bundleno = 54 (0x36), region = 88  ;;  %s462_s6 = sshll.u32 (!%p234_p8), %s240_s5, 2  ;;  %v333_v12 = vunpack.c.l.s4 (!%p234_p8), %v549_v11 }
  0x21   : > { %v300_v5 = vshrl.u32 (!%p234_p8), %v284_v4, 7  ;;  %s242_s7 = scalar_lea.vmem (!%p234_p8), [#allocation2], %s462_s6  ;;  %vm627_vm0 = vcmp.lt.s32.totalorder (!%p234_p8), %v284_v4, 256  ;;  %s249_s8 = scalar_lea.vmem (!%p234_p8), [#allocation3], %s462_s6 }
  0x22   : > { %v289_v6 = vld [vmem:[%s242_s7] sm:$0x3] (!%p234_p8)  ;;  %v290_v7 = vld [vmem:[%s242_s7 + $0x2] sm:$0x3] (!%p234_p8)  ;;  %v291_v9 = vld [vmem:[%s249_s8] sm:$0x3] (!%p234_p8)  ;;  %v334_v20 = vunpack.c.0.s8 (!%p234_p8), %v333_v12 }
  0x23   : > { %v292_v10 = vld [vmem:[%s249_s8 + $0x2] sm:$0x3] (!%p234_p8)  ;;  %v293_v13 = vsub.f32 (!%p234_p8), %v289_v6, %v291_v9  ;;  %v301_v15 = vsub.s32 (!%p234_p8), 0, %v300_v5  ;;  %v305_v16 = vsub.s32 (!%p234_p8), 1, %v300_v5 }
  0x24   : > { %v294_v14 = vsub.f32 (!%p234_p8), %v290_v7, %v292_v10  ;;  %v337_v31 = vsub.s32 (!%p234_p8), %v334_v20, %v300_v5 }
  0x25   : > { %v295_v18 = vmul.f32 (!%p234_p8), %v293_v13, %v293_v13 }
  0x26   : > { %v296_v19 = vmul.f32 (!%p234_p8), %v294_v14, %v294_v14 }
  0x27   : > { %s666_s11 = smov (!%p275_p9, %s539_s11), 3  ;;  %v302_v21 = vrot.slane %v295_v18, %v301_v15  ;;  %v306_v22 = vrot.slane %v295_v18, %v305_v16 }
  0x28   : > { %s464_s15 = sshll.u32 %s666_s11, 1  ;;  %v310_v23 = vrot.slane %v296_v19, %v301_v15  ;;  %v314_v24 = vrot.slane %v296_v19, %v305_v16 }
  0x29   : > { %s278_s17 = scalar_lea.vmem %s655_s2, %s464_s15  ;;  %v320_v25 = vsel %vm319_vm1, %v302_v21, 0.0  ;;  %v323_v27 = vsel %vm319_vm1, %v306_v22, 0.0 }
  0x2a   : > { %288 = vst.msk [vmem:[%s278_s17] sm:$0x3] %vm627_vm0, %v550_v17  ;;  %v321_v26 = vsel %vm319_vm1, %v310_v23, 0.0  ;;  %v324_v28 = vsel %vm319_vm1, %v314_v24, 0.0 }
  0x2b   : > { %v322_v29 = vadd.f32 %v321_v26, %v320_v25  ;;  %v325_v30 = vadd.f32 %v324_v28, %v323_v27 }
  0x2d   : > { %v331_v32 = vcombine.low %v322_v29, %v325_v30 }
  0x2f   : > { %v338_v33 = vrot.slane %v331_v32, %v337_v31 }
  0x31   : > { %v328_v34 = vld [vmem:[%s278_s17] sm:$0x3]  ;;  %v345_v35 = vrot.slane %v338_v33, %v337_v31 }
  0x33   : > { %v347_v36 = vadd.f32 %v345_v35, %v328_v34 }
  0x35   : > { %352 = vst.msk [vmem:[%s278_s17] sm:$0x3] %vm627_vm0, %v347_v36 }
  0x36 PF: > { %s12_s13 = sadd.s32 1, %s547_s13   ;;  %s659_s9 = smov %s535_s10 }
  0x37   : > { %p9_p10 = scmp.ge.s32.totalorder %s12_s13, 6   ;;  %s660_s10 = smov %s605_s18 }
  0x38   : > { %s661_s11 = smov %s543_s12  ;;  %s662_s12 = smov %s664_s14 }
  0x39   :  { %11 = sbr.rel (!%p9_p10) target bundleno = 3 (0x3), region = 143 }

</bundles_post_ra>
